<compile_context>
chip_gen: v7x
topology: tpu7x:2x2x1
jax: 0.10.0
libtpu: 0.0.40
codegen_flags: <defaults>
</compile_context>

<pallas_src>
import functools

import jax
import jax.numpy as jnp
from jax.experimental import pallas as pl
from jax.experimental.pallas import tpu as pltpu


def _round_up(x, m):
    return (x + m - 1) // m * m


def _pick_p_tile(P, b_tile, pd_p, budget_bytes=12 << 20):
    """Largest multiple-of-8 divisor of P whose double-buffered bf16 patch
    block (2 bufs x b_tile x p_tile x pd_p x 2B) fits the VMEM budget."""
    for cand in (1024, 512, 256, 128, 64, 32, 16, 8):
        if P % cand == 0 and 2 * b_tile * cand * pd_p * 2 <= budget_bytes:
            return cand
    return P  # full axis as one block (block == full array dim is legal)


# ---------------------------------------------------------------------------
# Pallas kernel
# ---------------------------------------------------------------------------
def _efficientformer_kernel(patches_ref, stem_w_ref, stem_b_ref,
                            w1_ref, b1_ref, w2_ref, b2_ref,
                            f_ref, g_ref, acc_ref, *, inv_p):
    # Grid: (batch tiles [parallel], patch tiles [arbitrary reduction]).
    # patches_ref : (b_tile, p_tile, pd_p)  bf16, zero-padded lanes
    # stem_w_ref  : (pd_p, feat_p) bf16 ; stem_b_ref: (1, feat_p) f32
    # w1_ref      : (feat_p, feat_p) bf16; b1_ref   : (1, feat_p) f32
    # w2_ref      : (feat_p, emb_p)  bf16; b2_ref   : (1, emb_p)  f32
    # f_ref       : (b_tile, feat_p) f32 out (normalized backbone features)
    # g_ref       : (b_tile, emb_p)  f32 out (normalized projector output)
    # acc_ref     : (b_tile, feat_p) f32 scratch (pooled-sum accumulator)
    p_idx = pl.program_id(1)
    last_p = pl.num_programs(1) - 1

    @pl.when(p_idx == 0)
    def _init():
        acc_ref[...] = jnp.zeros_like(acc_ref)

    b_tile, p_tile, pd = patches_ref.shape
    feat = acc_ref.shape[-1]

    # --- backbone surrogate: patch embedding (MXU, bf16 x bf16 -> f32 acc) ---
    # Collapse (b_tile, p_tile) into one big M dim for a single MXU matmul;
    # p_tile is a multiple of 8 and pd a multiple of 128, so the reshape is a
    # no-op relayout.
    patches = patches_ref[...].reshape(b_tile * p_tile, pd)
    h = jnp.dot(patches, stem_w_ref[...], preferred_element_type=jnp.float32)
    h = jnp.maximum(h + stem_b_ref[...], 0.0)            # per-patch bias + ReLU
    # Per-batch pool-sum: cross-sublane reduce (XLU slot, off the VALU path).
    acc_ref[...] += jnp.sum(h.reshape(b_tile, p_tile, feat), axis=1)

    @pl.when(p_idx == last_p)
    def _finalize():
        eps2 = jnp.float32(1e-24)                        # (F.normalize eps)^2
        f = acc_ref[...] * jnp.float32(inv_p)            # global average pool

        # F.normalize(f, dim=1); padded lanes are exactly 0 -> norm unaffected.
        f_n = f * jax.lax.rsqrt(
            jnp.maximum(jnp.sum(f * f, axis=-1, keepdims=True), eps2))
        f_ref[...] = f_n

        # projector: Linear -> ReLU -> Linear (MXU bf16 inputs, f32 acc)
        z = jnp.dot(f_n.astype(jnp.bfloat16), w1_ref[...],
                    preferred_element_type=jnp.float32) + b1_ref[...]
        z = jnp.maximum(z, 0.0)
        g = jnp.dot(z.astype(jnp.bfloat16), w2_ref[...],
                    preferred_element_type=jnp.float32) + b2_ref[...]

        # F.normalize(g, dim=1)
        g_n = g * jax.lax.rsqrt(
            jnp.maximum(jnp.sum(g * g, axis=-1, keepdims=True), eps2))
        g_ref[...] = g_n


# ---------------------------------------------------------------------------
# Wrapper
# ---------------------------------------------------------------------------
@functools.partial(jax.jit, static_argnames=("patch",))
def efficientformer_forward(x_nchw, params, patch=4):
    """x_nchw: (B, C, H, W) float32. Returns (f, g) like the PyTorch module."""
    stem_w, stem_b, w1, b1, w2, b2 = params
    B, C, H, W = x_nchw.shape
    patch_dim = patch * patch * C
    feat_dim = stem_w.shape[1]
    emb_dim = w2.shape[1]

    # Padded sizes: lanes to 128, batch sublanes to 8.
    pd_p = _round_up(patch_dim, 128)
    feat_p = _round_up(feat_dim, 128)
    emb_p = _round_up(emb_dim, 128)
    B_p = _round_up(B, 8)

    # ---- im2col glue (XLA): NCHW -> (B, P, patch_dim) ----------------------
    x = jnp.transpose(x_nchw, (0, 2, 3, 1))                      # NHWC
    x = x.reshape(B, H // patch, patch, W // patch, patch, C)
    x = jnp.transpose(x, (0, 1, 3, 2, 4, 5))                     # (B,Hp,Wp,p,p,C)
    P = (H // patch) * (W // patch)
    patches = x.reshape(B, P, patch_dim)

    # ---- zero-pad to TPU-friendly shapes; bf16 for MXU operands ------------
    patches = jnp.pad(
        patches, ((0, B_p - B), (0, 0), (0, pd_p - patch_dim))
    ).astype(jnp.bfloat16)
    stem_w_p = jnp.pad(stem_w, ((0, pd_p - patch_dim),
                                (0, feat_p - feat_dim))).astype(jnp.bfloat16)
    stem_b_p = jnp.pad(stem_b, ((0, 0), (0, feat_p - feat_dim))).astype(jnp.float32)
    w1_p = jnp.pad(w1, ((0, feat_p - feat_dim),
                        (0, feat_p - feat_dim))).astype(jnp.bfloat16)
    b1_p = jnp.pad(b1, ((0, 0), (0, feat_p - feat_dim))).astype(jnp.float32)
    w2_p = jnp.pad(w2, ((0, feat_p - feat_dim),
                        (0, emb_p - emb_dim))).astype(jnp.bfloat16)
    b2_p = jnp.pad(b2, ((0, 0), (0, emb_p - emb_dim))).astype(jnp.float32)

    # ---- tiling: batch tiles (parallel) x patch tiles (reduction) ----------
    b_tile = 8
    p_tile = _pick_p_tile(P, b_tile, pd_p)    # biggest tile that fits VMEM budget
    grid = (B_p // b_tile, pl.cdiv(P, p_tile))

    flops = (2 * B_p * P * pd_p * feat_p
             + 2 * B_p * feat_p * feat_p
             + 2 * B_p * feat_p * emb_p)
    bytes_accessed = (patches.size * 2 + stem_w_p.size * 2 + w1_p.size * 2
                      + w2_p.size * 2 + (B_p * feat_p + B_p * emb_p) * 4)

    kernel = functools.partial(_efficientformer_kernel, inv_p=1.0 / P)

    f_pad, g_pad = pl.pallas_call(
        kernel,
        out_shape=(
            jax.ShapeDtypeStruct((B_p, feat_p), jnp.float32),
            jax.ShapeDtypeStruct((B_p, emb_p), jnp.float32),
        ),
        grid_spec=pltpu.PrefetchScalarGridSpec(
            num_scalar_prefetch=0,
            grid=grid,
            in_specs=[
                pl.BlockSpec((b_tile, p_tile, pd_p), lambda b, p: (b, p, 0)),
                pl.BlockSpec((pd_p, feat_p), lambda b, p: (0, 0)),
                pl.BlockSpec((1, feat_p), lambda b, p: (0, 0)),
                pl.BlockSpec((feat_p, feat_p), lambda b, p: (0, 0)),
                pl.BlockSpec((1, feat_p), lambda b, p: (0, 0)),
                pl.BlockSpec((feat_p, emb_p), lambda b, p: (0, 0)),
                pl.BlockSpec((1, emb_p), lambda b, p: (0, 0)),
            ],
            out_specs=(
                pl.BlockSpec((b_tile, feat_p), lambda b, p: (b, 0)),
                pl.BlockSpec((b_tile, emb_p), lambda b, p: (b, 0)),
            ),
            scratch_shapes=[pltpu.VMEM((b_tile, feat_p), jnp.float32)],
        ),
        compiler_params=pltpu.CompilerParams(
            dimension_semantics=("parallel", "arbitrary"),
            vmem_limit_bytes=64 << 20,
        ),
        cost_estimate=pl.CostEstimate(flops=flops, transcendentals=2 * B_p,
                                      bytes_accessed=bytes_accessed),
    )(patches, stem_w_p, stem_b_p, w1_p, b1_p, w2_p, b2_p)

    # Slice logical sizes back out of the padded outputs.
    return f_pad[:B, :feat_dim], g_pad[:B, :emb_dim]


# ---------------------------------------------------------------------------
# Pure-JAX (f32) reference for correctness check
# ---------------------------------------------------------------------------
def _reference_forward(x_nchw, params, patch=4):
    stem_w, stem_b, w1, b1, w2, b2 = params
    B, C, H, W = x_nchw.shape
    x = jnp.transpose(x_nchw, (0, 2, 3, 1))
    x = x.reshape(B, H // patch, patch, W // patch, patch, C)
    x = jnp.transpose(x, (0, 1, 3, 2, 4, 5))
    P = (H // patch) * (W // patch)
    patches = x.reshape(B, P, patch * patch * C)
    h = jnp.maximum(jnp.einsum('bpd,df->bpf', patches, stem_w) + stem_b, 0.0)
    f = jnp.mean(h, axis=1)
    f_n = f / jnp.maximum(jnp.linalg.norm(f, axis=1, keepdims=True), 1e-12)
    z = jnp.maximum(f_n @ w1 + b1, 0.0)
    g = z @ w2 + b2
    g_n = g / jnp.maximum(jnp.linalg.norm(g, axis=1, keepdims=True), 1e-12)
    return f_n, g_n


if __name__ == "__main__":
    # Small shapes consistent with the module's forward.
    B, C, H, W = 2, 3, 16, 16
    PATCH = 4
    FEAT_DIM = 32          # stands in for efficientformer_l1 num_features (448)
    EMB_DIM = 16           # embedding_dim of the projection head

    key = jax.random.PRNGKey(0)
    k_x, k_sw, k_sb, k_w1, k_b1, k_w2, k_b2 = jax.random.split(key, 7)

    x = jax.random.normal(k_x, (B, C, H, W), dtype=jnp.float32)

    patch_dim = PATCH * PATCH * C
    stem_w = jax.random.normal(k_sw, (patch_dim, FEAT_DIM), jnp.float32) * 0.1
    stem_b = jax.random.normal(k_sb, (1, FEAT_DIM), jnp.float32) * 0.01
    w1 = jax.random.normal(k_w1, (FEAT_DIM, FEAT_DIM), jnp.float32) * 0.1
    b1 = jax.random.normal(k_b1, (1, FEAT_DIM), jnp.float32) * 0.01
    w2 = jax.random.normal(k_w2, (FEAT_DIM, EMB_DIM), jnp.float32) * 0.1
    b2 = jax.random.normal(k_b2, (1, EMB_DIM), jnp.float32) * 0.01
    params = (stem_w, stem_b, w1, b1, w2, b2)

    f, g = efficientformer_forward(x, params, patch=PATCH)
    jax.block_until_ready((f, g))

    f_ref, g_ref = _reference_forward(x, params, patch=PATCH)
    assert f.shape == (B, FEAT_DIM) and g.shape == (B, EMB_DIM)
    # bf16 MXU operands with f32 accumulation vs f32 reference -> loosened tol.
    assert jnp.allclose(f, f_ref, atol=2e-2, rtol=2e-2)
    assert jnp.allclose(g, g_ref, atol=2e-2, rtol=2e-2)

    print("KERNEL_OK")
</pallas_src>

<mosaic_0001>
module attributes {stable_mosaic.version = 11 : i64} {
  func.func @_efficientformer_kernel(%arg0: i32, %arg1: i32, %arg2: memref<8x16x128xbf16, #tpu.memory_space<vmem>>, %arg3: memref<128x128xbf16, #tpu.memory_space<vmem>>, %arg4: memref<1x128xf32, #tpu.memory_space<vmem>>, %arg5: memref<128x128xbf16, #tpu.memory_space<vmem>>, %arg6: memref<1x128xf32, #tpu.memory_space<vmem>>, %arg7: memref<128x128xbf16, #tpu.memory_space<vmem>>, %arg8: memref<1x128xf32, #tpu.memory_space<vmem>>, %arg9: memref<8x128xf32, #tpu.memory_space<vmem>>, %arg10: memref<8x128xf32, #tpu.memory_space<vmem>>, %arg11: memref<8x128xf32, #tpu.memory_space<vmem>>) attributes {dimension_semantics = [#tpu.dimension_semantics<parallel>, #tpu.dimension_semantics<arbitrary>], iteration_bounds = array<i64: 1, 1>, scalar_prefetch = 0 : i64, scratch_operands = 1 : i64, tpu.core_type = #tpu.core_type<tc>, window_params = [{transform_indices = @transform_0, window_bounds = array<i64: 8, 16, 128>}, {pipeline_mode = #tpu.pipeline_mode<synchronous>, transform_indices = @transform_1, window_bounds = array<i64: 128, 128>}, {pipeline_mode = #tpu.pipeline_mode<synchronous>, transform_indices = @transform_2, window_bounds = array<i64: 1, 128>}, {pipeline_mode = #tpu.pipeline_mode<synchronous>, transform_indices = @transform_3, window_bounds = array<i64: 128, 128>}, {pipeline_mode = #tpu.pipeline_mode<synchronous>, transform_indices = @transform_4, window_bounds = array<i64: 1, 128>}, {pipeline_mode = #tpu.pipeline_mode<synchronous>, transform_indices = @transform_5, window_bounds = array<i64: 128, 128>}, {pipeline_mode = #tpu.pipeline_mode<synchronous>, transform_indices = @transform_6, window_bounds = array<i64: 1, 128>}, {transform_indices = @transform_7, window_bounds = array<i64: 8, 128>}, {transform_indices = @transform_8, window_bounds = array<i64: 8, 128>}]} {
    %c0_i32 = arith.constant 0 : i32
    %0 = arith.cmpi eq, %arg1, %c0_i32 : i32
    %1 = arith.extui %0 : i1 to i32
    %c0_i32_0 = arith.constant 0 : i32
    %2 = arith.cmpi ne, %1, %c0_i32_0 : i32
    scf.if %2 {
      %cst_15 = arith.constant 0.000000e+00 : f32
      %20 = vector.broadcast %cst_15 : f32 to vector<8x128xf32>
      %c0_16 = arith.constant 0 : index
      %c0_17 = arith.constant 0 : index
      %21 = vector.load %arg11[%c0_16, %c0_17] : memref<8x128xf32, #tpu.memory_space<vmem>>, vector<8x128xf32>
      tpu.vector_store %arg11[%c0_16, %c0_17], %20 {strides = array<i32>} : memref<8x128xf32, #tpu.memory_space<vmem>>, vector<8x128xf32>,
    } else {
    }
    %c0 = arith.constant 0 : index
    %c0_1 = arith.constant 0 : index
    %c0_2 = arith.constant 0 : index
    %3 = vector.load %arg2[%c0, %c0_1, %c0_2] : memref<8x16x128xbf16, #tpu.memory_space<vmem>>, vector<8x16x128xbf16>
    %4 = vector.shape_cast %3 : vector<8x16x128xbf16> to vector<128x128xbf16>
    %c0_3 = arith.constant 0 : index
    %c0_4 = arith.constant 0 : index
    %5 = vector.load %arg3[%c0_3, %c0_4] : memref<128x128xbf16, #tpu.memory_space<vmem>>, vector<128x128xbf16>
    %cst = arith.constant dense<0.000000e+00> : vector<128x128xf32>
    %6 = tpu.matmul %4, %5, %cst {dimension_numbers = #tpu.dot_dimension_numbers<[1], [0], [0], [1], [0, 0, 1, 1], [], []>} : vector<128x128xbf16>, vector<128x128xbf16>, vector<128x128xf32> -> vector<128x128xf32>
    %c0_5 = arith.constant 0 : index
    %c0_6 = arith.constant 0 : index
    %7 = vector.load %arg4[%c0_5, %c0_6] : memref<1x128xf32, #tpu.memory_space<vmem>>, vector<1x128xf32>
    %8 = vector.broadcast %7 : vector<1x128xf32> to vector<128x128xf32>
    %9 = arith.addf %6, %8 : vector<128x128xf32>
    %cst_7 = arith.constant 0.000000e+00 : f32
    %10 = vector.broadcast %cst_7 : f32 to vector<128x128xf32>
    %11 = arith.maximumf %9, %10 : vector<128x128xf32>
    %c0_8 = arith.constant 0 : index
    %c0_9 = arith.constant 0 : index
    %12 = vector.load %arg11[%c0_8, %c0_9] : memref<8x128xf32, #tpu.memory_space<vmem>>, vector<8x128xf32>
    %13 = vector.shape_cast %11 : vector<128x128xf32> to vector<8x16x128xf32>
    %cst_10 = arith.constant dense<0.000000e+00> : vector<8x128xf32>
    %14 = vector.multi_reduction <add>, %13, %cst_10 [1] : vector<8x16x128xf32> to vector<8x128xf32>
    %15 = arith.addf %12, %14 : vector<8x128xf32>
    %c0_11 = arith.constant 0 : index
    %c0_12 = arith.constant 0 : index
    %16 = vector.load %arg11[%c0_11, %c0_12] : memref<8x128xf32, #tpu.memory_space<vmem>>, vector<8x128xf32>
    tpu.vector_store %arg11[%c0_11, %c0_12], %15 {strides = array<i32>} : memref<8x128xf32, #tpu.memory_space<vmem>>, vector<8x128xf32>,
    %c0_i32_13 = arith.constant 0 : i32
    %17 = arith.cmpi eq, %arg1, %c0_i32_13 : i32
    %18 = arith.extui %17 : i1 to i32
    %c0_i32_14 = arith.constant 0 : i32
    %19 = arith.cmpi ne, %18, %c0_i32_14 : i32
    scf.if %19 {
      %c0_15 = arith.constant 0 : index
      %c0_16 = arith.constant 0 : index
      %20 = vector.load %arg11[%c0_15, %c0_16] : memref<8x128xf32, #tpu.memory_space<vmem>>, vector<8x128xf32>
      %cst_17 = arith.constant 6.250000e-02 : f32
      %21 = vector.broadcast %cst_17 : f32 to vector<8x128xf32>
      %22 = arith.mulf %20, %21 : vector<8x128xf32>
      %23 = arith.mulf %22, %22 : vector<8x128xf32>
      %cst_18 = arith.constant dense<0.000000e+00> : vector<8xf32>
      %24 = vector.multi_reduction <add>, %23, %cst_18 [1] : vector<8x128xf32> to vector<8xf32>
      %25 = vector.shape_cast %24 : vector<8xf32> to vector<8x1xf32>
      %cst_19 = arith.constant 1.000000e-24 : f32
      %26 = vector.broadcast %cst_19 : f32 to vector<8x1xf32>
      %27 = arith.maximumf %25, %26 : vector<8x1xf32>
      %28 = math.rsqrt %27 : vector<8x1xf32>
      %29 = vector.broadcast %28 : vector<8x1xf32> to vector<8x128xf32>
      %30 = arith.mulf %22, %29 : vector<8x128xf32>
      %c0_20 = arith.constant 0 : index
      %c0_21 = arith.constant 0 : index
      %31 = vector.load %arg9[%c0_20, %c0_21] : memref<8x128xf32, #tpu.memory_space<vmem>>, vector<8x128xf32>
      tpu.vector_store %arg9[%c0_20, %c0_21], %30 {strides = array<i32>} : memref<8x128xf32, #tpu.memory_space<vmem>>, vector<8x128xf32>,
      %32 = arith.truncf %30 : vector<8x128xf32> to vector<8x128xbf16>
      %c0_22 = arith.constant 0 : index
      %c0_23 = arith.constant 0 : index
      %33 = vector.load %arg5[%c0_22, %c0_23] : memref<128x128xbf16, #tpu.memory_space<vmem>>, vector<128x128xbf16>
      %cst_24 = arith.constant dense<0.000000e+00> : vector<8x128xf32>
      %34 = tpu.matmul %32, %33, %cst_24 {dimension_numbers = #tpu.dot_dimension_numbers<[1], [0], [0], [1], [0, 0, 1, 1], [], []>} : vector<8x128xbf16>, vector<128x128xbf16>, vector<8x128xf32> -> vector<8x128xf32>
      %c0_25 = arith.constant 0 : index
      %c0_26 = arith.constant 0 : index
      %35 = vector.load %arg6[%c0_25, %c0_26] : memref<1x128xf32, #tpu.memory_space<vmem>>, vector<1x128xf32>
      %36 = vector.broadcast %35 : vector<1x128xf32> to vector<8x128xf32>
      %37 = arith.addf %34, %36 : vector<8x128xf32>
      %cst_27 = arith.constant 0.000000e+00 : f32
      %38 = vector.broadcast %cst_27 : f32 to vector<8x128xf32>
      %39 = arith.maximumf %37, %38 : vector<8x128xf32>
      %40 = arith.truncf %39 : vector<8x128xf32> to vector<8x128xbf16>
      %c0_28 = arith.constant 0 : index
      %c0_29 = arith.constant 0 : index
      %41 = vector.load %arg7[%c0_28, %c0_29] : memref<128x128xbf16, #tpu.memory_space<vmem>>, vector<128x128xbf16>
      %cst_30 = arith.constant dense<0.000000e+00> : vector<8x128xf32>
      %42 = tpu.matmul %40, %41, %cst_30 {dimension_numbers = #tpu.dot_dimension_numbers<[1], [0], [0], [1], [0, 0, 1, 1], [], []>} : vector<8x128xbf16>, vector<128x128xbf16>, vector<8x128xf32> -> vector<8x128xf32>
      %c0_31 = arith.constant 0 : index
      %c0_32 = arith.constant 0 : index
      %43 = vector.load %arg8[%c0_31, %c0_32] : memref<1x128xf32, #tpu.memory_space<vmem>>, vector<1x128xf32>
      %44 = vector.broadcast %43 : vector<1x128xf32> to vector<8x128xf32>
      %45 = arith.addf %42, %44 : vector<8x128xf32>
      %46 = arith.mulf %45, %45 : vector<8x128xf32>
      %cst_33 = arith.constant dense<0.000000e+00> : vector<8xf32>
      %47 = vector.multi_reduction <add>, %46, %cst_33 [1] : vector<8x128xf32> to vector<8xf32>
      %48 = vector.shape_cast %47 : vector<8xf32> to vector<8x1xf32>
      %cst_34 = arith.constant 1.000000e-24 : f32
      %49 = vector.broadcast %cst_34 : f32 to vector<8x1xf32>
      %50 = arith.maximumf %48, %49 : vector<8x1xf32>
      %51 = math.rsqrt %50 : vector<8x1xf32>
      %52 = vector.broadcast %51 : vector<8x1xf32> to vector<8x128xf32>
      %53 = arith.mulf %45, %52 : vector<8x128xf32>
      %c0_35 = arith.constant 0 : index
      %c0_36 = arith.constant 0 : index
      %54 = vector.load %arg10[%c0_35, %c0_36] : memref<8x128xf32, #tpu.memory_space<vmem>>, vector<8x128xf32>
      tpu.vector_store %arg10[%c0_35, %c0_36], %53 {strides = array<i32>} : memref<8x128xf32, #tpu.memory_space<vmem>>, vector<8x128xf32>,
    } else {
    }
    return
  }
  func.func @transform_0(%arg0: i32, %arg1: i32) -> (i32, i32, i32) {
    %c0_i32 = arith.constant 0 : i32
    %c0_i32_0 = arith.constant 0 : i32
    return %arg0, %arg1, %c0_i32 : i32, i32, i32
  }
  func.func @transform_1(%arg0: i32, %arg1: i32) -> (i32, i32) {
    %c0_i32 = arith.constant 0 : i32
    %c0_i32_0 = arith.constant 0 : i32
    %c0_i32_1 = arith.constant 0 : i32
    return %c0_i32, %c0_i32_0 : i32, i32
  }
  func.func @transform_2(%arg0: i32, %arg1: i32) -> (i32, i32) {
    %c0_i32 = arith.constant 0 : i32
    %c0_i32_0 = arith.constant 0 : i32
    %c0_i32_1 = arith.constant 0 : i32
    return %c0_i32, %c0_i32_0 : i32, i32
  }
  func.func @transform_3(%arg0: i32, %arg1: i32) -> (i32, i32) {
    %c0_i32 = arith.constant 0 : i32
    %c0_i32_0 = arith.constant 0 : i32
    %c0_i32_1 = arith.constant 0 : i32
    return %c0_i32, %c0_i32_0 : i32, i32
  }
  func.func @transform_4(%arg0: i32, %arg1: i32) -> (i32, i32) {
    %c0_i32 = arith.constant 0 : i32
    %c0_i32_0 = arith.constant 0 : i32
    %c0_i32_1 = arith.constant 0 : i32
    return %c0_i32, %c0_i32_0 : i32, i32
  }
  func.func @transform_5(%arg0: i32, %arg1: i32) -> (i32, i32) {
    %c0_i32 = arith.constant 0 : i32
    %c0_i32_0 = arith.constant 0 : i32
    %c0_i32_1 = arith.constant 0 : i32
    return %c0_i32, %c0_i32_0 : i32, i32
  }
  func.func @transform_6(%arg0: i32, %arg1: i32) -> (i32, i32) {
    %c0_i32 = arith.constant 0 : i32
    %c0_i32_0 = arith.constant 0 : i32
    %c0_i32_1 = arith.constant 0 : i32
    return %c0_i32, %c0_i32_0 : i32, i32
  }
  func.func @transform_7(%arg0: i32, %arg1: i32) -> (i32, i32) {
    %c0_i32 = arith.constant 0 : i32
    %c0_i32_0 = arith.constant 0 : i32
    return %arg0, %c0_i32 : i32, i32
  }
  func.func @transform_8(%arg0: i32, %arg1: i32) -> (i32, i32) {
    %c0_i32 = arith.constant 0 : i32
    %c0_i32_0 = arith.constant 0 : i32
    return %arg0, %c0_i32 : i32, i32
  }
}

</mosaic_0001>

<bundles_post_ra>
// kernel: efficientformer_forward.1
= control target key start
LH: loop header
LB: loop body
LE: loop exit
PB: predicated region body
PF: predicated region fallthrough
CT: control target
= control target key end

     0   :  { %14 = vsyncpa [#allocation4], 0  ;;  %s1359_s0 = inlined_call_operand.hbm [shape: bf16[8,16,128], index: 0, kind: input, shape index: {}]   ;;  %s1360_s1 = inlined_call_operand.hbm [shape: bf16[128,128], index: 1, kind: input, shape index: {}]   ;;  %s1361_s2 = inlined_call_operand.hbm [shape: f32[1,128], index: 2, kind: input, shape index: {}]   ;;  %s1362_s3 = inlined_call_operand.hbm [shape: bf16[128,128], index: 3, kind: input, shape index: {}]   ;;  %s1363_s4 = inlined_call_operand.hbm [shape: f32[1,128], index: 4, kind: input, shape index: {}]   ;;  %s1364_s5 = inlined_call_operand.hbm [shape: bf16[128,128], index: 5, kind: input, shape index: {}]   ;;  %s1365_s6 = inlined_call_operand.hbm [shape: f32[1,128], index: 6, kind: input, shape index: {}]   ;;  %s1366_s7 = inlined_call_operand.hbm [shape: f32[8,128], index: 7, kind: output, shape index: {0}]   ;;  %s1367_s8 = inlined_call_operand.hbm [shape: f32[8,128], index: 8, kind: output, shape index: {1}]  }
   0x1   :  { %15 = vsyncpa [#allocation7], 0 }
   0x2   :  { %16 = vsyncpa [#allocation10], 0 }
   0x3   :  { %17 = vsyncpa [#allocation13], 0 }
   0x4   :  { %18 = vsyncpa [#allocation5], 0 }
   0x5   :  { %19 = vsyncpa [#allocation17], 0  ;;  %s1131_s27 = smov [#allocation6]   ;;  %s1132_s29 = smov [#allocation9]  }
   0x6   :  { %s37_s28 = sshll.u32 %s1131_s27, 4  ;;  %s59_s30 = sshll.u32 %s1132_s29, 4  ;;  %s38_s28 = int_to_ptr.vmem [resolvable:$true] %s37_s28  ;;  %s1189_s30 = int_to_ptr.vmem [resolvable:$true] %s59_s30 }
   0x7   :  { %s921_s11 = scalar_lea.hbm %s1360_s1, 1024 }
   0x8   :  { %p922_p0 = scmp.ne.s32.totalorder %s1360_s1, %s921_s11  ;;  %p925_p1 = scmp.lt.u32.totalorder %s921_s11, %s1360_s1 }
   0xa   :  { %p927_p2 = pnand %p925_p1, %p922_p0 }
   0xc   :  { %930 = shalt.err (!%p927_p2)
}
   0xd   :  { %s931_s16 = scalar_lea.vmem %s38_s28, 1024  ;;  %p936_p4 = scmp.lt.s32.totalorder %s38_s28, %s38_s28 }
   0xe   :  { %p932_p3 = scmp.ne.s32.totalorder %s38_s28, %s931_s16  ;;  %p937_p5 = scmp.lt.s32.totalorder %s931_s16, %s931_s16 }
  0x10   :  { %p938_p6 = por %p937_p5, %p936_p4 }
  0x12   :  { %p939_p7 = pnand %p938_p6, %p932_p3 }
  0x14   :  { %942 = shalt.err (!%p939_p7)
}
  0x15   :  { %s1133_s17 = smov 64   ;;  %s1134_s18 = smov 4  }
  0x16   :  { %43 = dma.hbm_to_vmem [thread:$0]  %s1360_s1, 1024, %s38_s28, [#allocation7], %s1133_s17, %s1133_s17, %s1134_s18  }
  0x17   :  { %s943_s23 = scalar_lea.hbm %s1362_s3, 1024 }
  0x18   :  { %p944_p8 = scmp.ne.s32.totalorder %s1362_s3, %s943_s23  ;;  %p947_p9 = scmp.lt.u32.totalorder %s943_s23, %s1362_s3 }
  0x1a   :  { %p949_p10 = pnand %p947_p9, %p944_p8 }
  0x1c   :  { %952 = shalt.err (!%p949_p10)
}
  0x1d   :  { %s953_s29 = scalar_lea.vmem %s1189_s30, 1024  ;;  %p958_p12 = scmp.lt.s32.totalorder %s1189_s30, %s1189_s30 }
  0x1e   :  { %p954_p11 = scmp.ne.s32.totalorder %s1189_s30, %s953_s29  ;;  %p959_p13 = scmp.lt.s32.totalorder %s953_s29, %s953_s29 }
  0x20   :  { %p960_p0 = por %p959_p13, %p958_p12 }
  0x22   :  { %p961_p1 = pnand %p960_p0, %p954_p11 }
  0x24   :  { %964 = shalt.err (!%p961_p1)
}
  0x25   :  { %65 = dma.hbm_to_vmem [thread:$0]  %s1362_s3, 1024, %s1189_s30, [#allocation10], %s1133_s17, %s1133_s17, %s1134_s18  }
  0x26   :  { %s1135_s9 = smov [#allocation12]   ;;  %s1136_s11 = smov [#allocation3]  }
  0x27   :  { %s81_s10 = sshll.u32 %s1135_s9, 4  ;;  %s25_s12 = sshll.u32 %s1136_s11, 4  ;;  %s82_s10 = int_to_ptr.vmem [resolvable:$true] %s81_s10  ;;  %s1226_s12 = int_to_ptr.vmem [resolvable:$true] %s25_s12 }
  0x28   :  { %s965_s15 = scalar_lea.hbm %s1364_s5, 1024 }
  0x29   :  { %p966_p2 = scmp.ne.s32.totalorder %s1364_s5, %s965_s15  ;;  %p969_p3 = scmp.lt.u32.totalorder %s965_s15, %s1364_s5 }
  0x2b   :  { %p971_p4 = pnand %p969_p3, %p966_p2 }
  0x2d   :  { %974 = shalt.err (!%p971_p4)
}
  0x2e   :  { %s975_s3 = scalar_lea.vmem %s82_s10, 1024  ;;  %p980_p6 = scmp.lt.s32.totalorder %s82_s10, %s82_s10 }
  0x2f   :  { %p976_p5 = scmp.ne.s32.totalorder %s82_s10, %s975_s3  ;;  %p981_p7 = scmp.lt.s32.totalorder %s975_s3, %s975_s3 }
  0x31   :  { %p982_p8 = por %p981_p7, %p980_p6 }
  0x33   :  { %p983_p9 = pnand %p982_p8, %p976_p5 }
  0x35   :  { %986 = shalt.err (!%p983_p9)
}
  0x36   :  { %87 = dma.hbm_to_vmem [thread:$0]  %s1364_s5, 1024, %s82_s10, [#allocation13], %s1133_s17, %s1133_s17, %s1134_s18  }
  0x37   :  { %s987_s25 = scalar_lea.hbm %s1359_s0, 1024 }
  0x38   :  { %p988_p10 = scmp.ne.s32.totalorder %s1359_s0, %s987_s25  ;;  %p991_p11 = scmp.lt.u32.totalorder %s987_s25, %s1359_s0 }
  0x3a   :  { %p993_p12 = pnand %p991_p11, %p988_p10 }
  0x3c   :  { %996 = shalt.err (!%p993_p12)
}
  0x3d   :  { %s997_s28 = scalar_lea.vmem %s1226_s12, 1024  ;;  %p1002_p0 = scmp.lt.s32.totalorder %s1226_s12, %s1226_s12 }
  0x3e   :  { %p998_p13 = scmp.ne.s32.totalorder %s1226_s12, %s997_s28  ;;  %p1003_p1 = scmp.lt.s32.totalorder %s997_s28, %s997_s28 }
  0x40   :  { %p1004_p2 = por %p1003_p1, %p1002_p0 }
  0x42   :  { %p1005_p3 = pnand %p1004_p2, %p998_p13 }
  0x44   :  { %1008 = shalt.err (!%p1005_p3)
}
  0x45   :  { %31 = dma.hbm_to_vmem [thread:$0]  %s1359_s0, 1024, %s1226_s12, [#allocation4], %s1133_s17, %s1133_s17, %s1134_s18  }
  0x46   :  { %s1137_s10 = smov [#allocation8]   ;;  %s1138_s13 = smov [#allocation11]  }
  0x47   :  { %s50_s11 = sshll.u32 %s1137_s10, 4  ;;  %s72_s14 = sshll.u32 %s1138_s13, 4  ;;  %s51_s11 = int_to_ptr.vmem [resolvable:$true] %s50_s11  ;;  %s73_s14 = int_to_ptr.vmem [resolvable:$true] %s72_s14 }
  0x48   :  { %s1009_s19 = scalar_lea.hbm %s1361_s2, 16 }
  0x49   :  { %p1010_p4 = scmp.ne.s32.totalorder %s1361_s2, %s1009_s19  ;;  %p1013_p5 = scmp.lt.u32.totalorder %s1009_s19, %s1361_s2 }
  0x4b   :  { %p1015_p6 = pnand %p1013_p5, %p1010_p4 }
  0x4d   :  { %1018 = shalt.err (!%p1015_p6)
}
  0x4e   :  { %s1019_s0 = scalar_lea.vmem %s51_s11, 16  ;;  %s1023_s17 = scalar_lea.vmem %s51_s11, 32 }
  0x4f   :  { %p1020_p7 = scmp.ne.s32.totalorder %s51_s11, %s1019_s0  ;;  %p1024_p8 = scmp.lt.s32.totalorder %s51_s11, %s51_s11 }
  0x50   :  { %p1025_p9 = scmp.lt.s32.totalorder %s1023_s17, %s1019_s0 }
  0x52   :  { %p1026_p10 = por %p1025_p9, %p1024_p8 }
  0x54   :  { %p1027_p11 = pnand %p1026_p10, %p1020_p7 }
  0x56   :  { %1030 = shalt.err (!%p1027_p11)
}
  0x57   :  { %53 = dma.hbm_to_vmem [thread:$0]  %s1361_s2, 16, %s51_s11, [#allocation7]  }
  0x58   :  { %s1031_s24 = scalar_lea.hbm %s1363_s4, 16 }
  0x59   :  { %p1032_p12 = scmp.ne.s32.totalorder %s1363_s4, %s1031_s24  ;;  %p1035_p13 = scmp.lt.u32.totalorder %s1031_s24, %s1363_s4 }
  0x5b   :  { %p1037_p0 = pnand %p1035_p13, %p1032_p12 }
  0x5d   :  { %1040 = shalt.err (!%p1037_p0)
}
  0x5e   :  { %s1041_s1 = scalar_lea.vmem %s73_s14, 16  ;;  %s1045_s28 = scalar_lea.vmem %s73_s14, 32 }
  0x5f   :  { %p1042_p1 = scmp.ne.s32.totalorder %s73_s14, %s1041_s1  ;;  %p1046_p2 = scmp.lt.s32.totalorder %s73_s14, %s73_s14 }
  0x60   :  { %p1047_p3 = scmp.lt.s32.totalorder %s1045_s28, %s1041_s1 }
  0x62   :  { %p1048_p4 = por %p1047_p3, %p1046_p2 }
  0x64   :  { %p1049_p5 = pnand %p1048_p4, %p1042_p1 }
  0x66   :  { %1052 = shalt.err (!%p1049_p5)
}
  0x67   :  { %75 = dma.hbm_to_vmem [thread:$0]  %s1363_s4, 16, %s73_s14, [#allocation10]  }
  0x68   :  { %s1139_s9 = smov [#allocation14]   ;;  %s1053_s15 = scalar_lea.hbm %s1365_s6, 16 }
  0x69   :  { %s94_s10 = sshll.u32 %s1139_s9, 4  ;;  %p1054_p6 = scmp.ne.s32.totalorder %s1365_s6, %s1053_s15  ;;  %s95_s10 = int_to_ptr.vmem [resolvable:$true] %s94_s10 }
  0x6a   :  { %p1057_p7 = scmp.lt.u32.totalorder %s1053_s15, %s1365_s6 }
  0x6c   :  { %p1059_p8 = pnand %p1057_p7, %p1054_p6 }
  0x6e   :  { %1062 = shalt.err (!%p1059_p8)
}
  0x6f   :  { %s1063_s3 = scalar_lea.vmem %s95_s10, 16  ;;  %s1067_s4 = scalar_lea.vmem %s95_s10, 32 }
  0x70   :  { %p1064_p9 = scmp.ne.s32.totalorder %s95_s10, %s1063_s3  ;;  %p1068_p10 = scmp.lt.s32.totalorder %s95_s10, %s95_s10 }
  0x71   :  { %p1069_p11 = scmp.lt.s32.totalorder %s1067_s4, %s1063_s3 }
  0x73   :  { %p1070_p12 = por %p1069_p11, %p1068_p10 }
  0x75   :  { %p1071_p13 = pnand %p1070_p12, %p1064_p9 }
  0x77   :  { %1074 = shalt.err (!%p1071_p13)
}
  0x78   :  { %97 = dma.hbm_to_vmem [thread:$0]  %s1365_s6, 16, %s95_s10, [#allocation13]  }
  0x79   :  { %1119 = dma.done.wait [#allocation4], 1024  }
  0x7a   :  { %1120 = vsyncadd [#allocation4], 4294966272 }
  0x7b   :  { %1121 = dma.done.wait [#allocation7], 1040  }
  0x7c   :  { %1122 = vsyncadd [#allocation7], 4294966256 }
  0x7d   :  { %1123 = dma.done.wait [#allocation10], 1040  }
  0x7e   :  { %1124 = vsyncadd [#allocation10], 4294966256 }
  0x7f   :  { %1125 = dma.done.wait [#allocation13], 1040  }
  0x80   :  { %1126 = vsyncadd [#allocation13], 4294966256  ;;  %v885_v0 = vld [vmem:[#allocation6] sm:$0xff]   ;;  %v886_v1 = vld [vmem:[#allocation6 + $0x8] sm:$0xff]   ;;  %v1140_v17 = vmov 0.0   ;;  %vm438_vm0 = vcmask 1041409  }
  0x81   :  { %800 = vmatprep.subr.bf16.mxu0 %v885_v0  ;;  %v887_v2 = vld [vmem:[#allocation6 + $0x10] sm:$0xff]   ;;  %v888_v3 = vld [vmem:[#allocation6 + $0x18] sm:$0xff]   ;;  %v893_v4 = vld [vmem:[#allocation3] sm:$0xff]   ;;  %832 = vmatprep.subr.bf16.mxu1 %v1140_v17  ;;  %vm440_vm1 = vcmask 1042434   ;;  %vm442_vm2 = vcmask 1043459   ;;  %vm444_vm3 = vcmask 1044484  }
  0x82   :  { %801 = vmatpush3.bf16.msra.mxu0 %v885_v0  ;;  %816 = vmatprep.mubr.bf16.mxu0 %v893_v4  ;;  %v889_v5 = vld [vmem:[#allocation6 + $0x20] sm:$0xff]   ;;  %v890_v6 = vld [vmem:[#allocation6 + $0x28] sm:$0xff]   ;;  %v891_v7 = vld [vmem:[#allocation6 + $0x30] sm:$0xff]   ;;  %vm446_vm4 = vcmask 1045509   ;;  %vm448_vm5 = vcmask 1046534   ;;  %vm450_vm6 = vcmask 1047559  }
  0x83   :  { %802 = vmatprep.subr.bf16.mxu0 %v886_v1  ;;  %v892_v8 = vld [vmem:[#allocation6 + $0x38] sm:$0xff]   ;;  %v894_v9 = vld [vmem:[#allocation3 + $0x8] sm:$0xff]   ;;  %v895_v10 = vld [vmem:[#allocation3 + $0x10] sm:$0xff]   ;;  %vm1141_vm7 = vmmov 0   ;;  %s1142_s6 = smov [#allocation15]  }
  0x84   :  { %v896_v11 = vld [vmem:[#allocation3 + $0x18] sm:$0xff]   ;;  %v897_v12 = vld [vmem:[#allocation3 + $0x20] sm:$0xff]   ;;  %v898_v13 = vld [vmem:[#allocation3 + $0x28] sm:$0xff]   ;;  %848 = vmatprep.mubr.msk.bf16.mxu1 %vm1141_vm7, %v1140_v17  ;;  %s705_s0 = sshll.u32 %s1142_s6, 4  ;;  %s706_s0 = int_to_ptr.vmem [resolvable:$true] %s705_s0 }
  0x85   :  { %v899_v14 = vld [vmem:[#allocation3 + $0x30] sm:$0xff]   ;;  %v900_v15 = vld [vmem:[#allocation3 + $0x38] sm:$0xff]   ;;  %v901_v16 = vld [vmem:[#allocation9] sm:$0xff]   ;;  %s1075_s17 = scalar_lea.vmem %s706_s0, 128  ;;  %p1080_p1 = scmp.lt.s32.totalorder %s706_s0, %s706_s0 }
  0x86   :  { %803 = vmatpush3.bf16.msra.mxu0 %v886_v1  ;;  %833 = vmatpush3.bf16.msra.mxu1 %v901_v16  ;;  %v902_v18 = vld [vmem:[#allocation9 + $0x8] sm:$0xff]   ;;  %v903_v19 = vld [vmem:[#allocation9 + $0x10] sm:$0xff]   ;;  %v904_v20 = vld [vmem:[#allocation9 + $0x18] sm:$0xff]   ;;  %p1076_p0 = scmp.ne.s32.totalorder %s706_s0, %s1075_s17  ;;  %p1081_p2 = scmp.lt.s32.totalorder %s1075_s17, %s1075_s17 }
  0x87   :  { %804 = vmatprep.subr.bf16.mxu0 %v887_v2  ;;  %834 = vmatprep.subr.bf16.mxu1 %v1140_v17  ;;  %v1305_v21 = vld [vmem:[#allocation8] ss:$0 sm:$0xff] }
  0x88   :  { %p1082_p3 = por %p1081_p2, %p1080_p1 }
  0x8a   :  { %805 = vmatpush3.bf16.msra.mxu0 %v887_v2  ;;  %835 = vmatpush3.bf16.msra.mxu1 %v902_v18  ;;  %p1083_p4 = pnand %p1082_p3, %p1076_p0 }
  0x8b   :  { %806 = vmatprep.subr.bf16.mxu0 %v888_v3  ;;  %836 = vmatprep.subr.bf16.mxu1 %v1140_v17 }
  0x8e   :  { %807 = vmatpush3.bf16.msra.mxu0 %v888_v3  ;;  %837 = vmatpush3.bf16.msra.mxu1 %v903_v19 }
  0x8f   :  { %808 = vmatprep.subr.bf16.mxu0 %v889_v5  ;;  %838 = vmatprep.subr.bf16.mxu1 %v1140_v17 }
  0x92   :  { %809 = vmatpush3.bf16.msra.mxu0 %v889_v5  ;;  %839 = vmatpush3.bf16.msra.mxu1 %v904_v20 }
  0x93   :  { %810 = vmatprep.subr.bf16.mxu0 %v890_v6  ;;  %840 = vmatprep.subr.bf16.mxu1 %v1140_v17 }
  0x96   :  { %811 = vmatpush3.bf16.msra.mxu0 %v890_v6 }
  0x97   :  { %812 = vmatprep.subr.bf16.mxu0 %v891_v7 }
  0x9a   :  { %813 = vmatpush3.bf16.msra.mxu0 %v891_v7 }
  0x9b   :  { %814 = vmatprep.subr.bf16.mxu0 %v892_v8 }
  0x9e   :  { %815 = vmatpush3.bf16.msra.mxu0 %v892_v8 }
  0x9f   :  { %852 = vmatprep.subr.bf16.mxu0 %v1140_v17 }
  0xa1   :  { %817 = vmatmul.mubr.bf16.vlgmr.msra.gmra.mrb[0].mxu0 %v894_v9 }
  0xa2   :  { %820 = vmatprep.mubr.bf16.mxu0 %v895_v10 }
  0xa9   :  { %821 = vmatmul.mubr.bf16.gmra.mrb[4].mxu0 %v896_v11 }
  0xaa   :  { %824 = vmatprep.mubr.bf16.mxu0 %v897_v12 }
  0xb1   :  { %825 = vmatmul.mubr.bf16.gmra.mrb[8].mxu0 %v898_v13 }
  0xb2   :  { %828 = vmatprep.mubr.bf16.mxu0 %v899_v14 }
  0xb9   :  { %829 = vmatmul.mubr.bf16.gmra.mrb[12].mxu0 %v900_v15 }
  0xba   :  { %868 = vmatprep.mubr.msk.bf16.mxu0 %vm1141_vm7, %v1140_v17 }
 0x174   :  { %v818_v22 = vpop.f32.mrb[0].mxu0 }
 0x175   :  { %v303_v23 = vadd.f32 %v818_v22, %v1305_v21  ;;  %v294_v24 = vpop.f32.mrb[1].mxu0 }
 0x176   :  { %v295_v25 = vadd.f32 %v1305_v21, %v294_v24  ;;  %v819_v26 = vpop.f32.mrb[2].mxu0 }
 0x177   :  { %v306_v27 = vadd.f32 %v819_v26, %v1305_v21  ;;  %v297_v28 = vpop.f32.mrb[3].mxu0  ;;  %v359_v30 = vmax.f32 %v303_v23, 0.0 }
 0x178   :  { %v298_v29 = vadd.f32 %v1305_v21, %v297_v28  ;;  %v357_v32 = vmax.f32 %v295_v25, 0.0 }
 0x179   :  { %v360_v31 = vmax.f32 %v306_v27, 0.0 }
 0x17a   :  { %v358_v33 = vmax.f32 %v298_v29, 0.0 }
 0x17b   :  { %v381_v34 = vadd.f32 %v360_v31, %v359_v30 }
 0x17c   :  { %v374_v35 = vadd.f32 %v358_v33, %v357_v32  ;;  %v822_v36 = vpop.f32.mrb[4].mxu0 }
 0x17d   :  { %v382_v37 = vrot.slane %v381_v34, 4  ;;  %v319_v38 = vadd.f32 %v822_v36, %v1305_v21  ;;  %v310_v39 = vpop.f32.mrb[5].mxu0 }
 0x17e   :  { %v375_v40 = vrot.slane %v374_v35, 4  ;;  %v311_v41 = vadd.f32 %v1305_v21, %v310_v39  ;;  %v823_v42 = vpop.f32.mrb[6].mxu0 }
 0x17f   :  { %v383_v43 = vadd.f32 %v382_v37, %v381_v34  ;;  %v322_v44 = vadd.f32 %v823_v42, %v1305_v21  ;;  %v313_v45 = vpop.f32.mrb[7].mxu0  ;;  %v363_v49 = vmax.f32 %v319_v38, 0.0 }
 0x180   :  { %v376_v46 = vadd.f32 %v375_v40, %v374_v35  ;;  %v314_v47 = vadd.f32 %v1305_v21, %v313_v45  ;;  %v361_v52 = vmax.f32 %v311_v41, 0.0 }
 0x181   :  { %v384_v48 = vrot.slane %v383_v43, 2  ;;  %v364_v50 = vmax.f32 %v322_v44, 0.0 }
 0x182   :  { %v377_v51 = vrot.slane %v376_v46, 2  ;;  %v362_v53 = vmax.f32 %v314_v47, 0.0 }
 0x183   :  { %v385_v54 = vadd.f32 %v384_v48, %v383_v43  ;;  %v395_v55 = vadd.f32 %v364_v50, %v363_v49 }
 0x184   :  { %v378_v56 = vadd.f32 %v377_v51, %v376_v46  ;;  %v388_v57 = vadd.f32 %v362_v53, %v361_v52  ;;  %v826_v58 = vpop.f32.mrb[8].mxu0 }
 0x185   :  { %v386_v59 = vrot.slane %v385_v54, 1  ;;  %v396_v60 = vrot.slane %v395_v55, 4  ;;  %v335_v61 = vadd.f32 %v826_v58, %v1305_v21  ;;  %v326_v62 = vpop.f32.mrb[9].mxu0 }
 0x186   :  { %v379_v63 = vrot.slane %v378_v56, 1  ;;  %v389_v0 = vrot.slane %v388_v57, 4  ;;  %v327_v1 = vadd.f32 %v1305_v21, %v326_v62  ;;  %v827_v2 = vpop.f32.mrb[10].mxu0 }
 0x187   :  { %v387_v3 = vadd.f32 %v386_v59, %v385_v54  ;;  %v397_v4 = vadd.f32 %v396_v60, %v395_v55  ;;  %v338_v5 = vadd.f32 %v827_v2, %v1305_v21  ;;  %v329_v6 = vpop.f32.mrb[11].mxu0  ;;  %v367_v11 = vmax.f32 %v335_v61, 0.0 }
 0x188   :  { %v380_v7 = vadd.f32 %v379_v63, %v378_v56  ;;  %v390_v8 = vadd.f32 %v389_v0, %v388_v57  ;;  %v330_v9 = vadd.f32 %v1305_v21, %v329_v6  ;;  %v365_v15 = vmax.f32 %v327_v1, 0.0 }
 0x189   :  { %v398_v10 = vrot.slane %v397_v4, 2  ;;  %v368_v12 = vmax.f32 %v338_v5, 0.0 }
 0x18a   :  { %v439_v13 = vsel %vm438_vm0, %v387_v3, %v380_v7  ;;  %v391_v14 = vrot.slane %v390_v8, 2  ;;  %v366_v16 = vmax.f32 %v330_v9, 0.0  ;;  %v906_v9 = vld [vmem:[#allocation9 + $0x28] sm:$0xff]  }
 0x18b   :  { %v399_v18 = vadd.f32 %v398_v10, %v397_v4  ;;  %v409_v19 = vadd.f32 %v368_v12, %v367_v11  ;;  %v907_v10 = vld [vmem:[#allocation9 + $0x30] sm:$0xff]   ;;  %v908_v11 = vld [vmem:[#allocation9 + $0x38] sm:$0xff]   ;;  %v909_v12 = vld [vmem:[#allocation12] sm:$0xff]  }
 0x18c   :  { %v392_v20 = vadd.f32 %v391_v14, %v390_v8  ;;  %v402_v22 = vadd.f32 %v366_v16, %v365_v15  ;;  %v830_v23 = vpop.f32.mrb[12].mxu0  ;;  %v905_v8 = vld [vmem:[#allocation9 + $0x20] sm:$0xff]   ;;  %853 = vmatpush3.bf16.msra.mxu0 %v909_v12  ;;  %v911_v14 = vld [vmem:[#allocation12 + $0x10] sm:$0xff]  }
 0x18d   :  { %v400_v24 = vrot.slane %v399_v18, 1  ;;  %v410_v25 = vrot.slane %v409_v19, 4  ;;  %v351_v26 = vadd.f32 %v830_v23, %v1305_v21  ;;  %v342_v27 = vpop.f32.mrb[13].mxu0  ;;  %841 = vmatpush3.bf16.msra.mxu1 %v905_v8  ;;  %854 = vmatprep.subr.bf16.mxu0 %v1140_v17  ;;  %v912_v15 = vld [vmem:[#allocation12 + $0x18] sm:$0xff]   ;;  %v913_v16 = vld [vmem:[#allocation12 + $0x20] sm:$0xff]  }
 0x18e   :  { %v393_v28 = vrot.slane %v392_v20, 1  ;;  %v403_v29 = vrot.slane %v402_v22, 4  ;;  %v343_v30 = vadd.f32 %v1305_v21, %v342_v27  ;;  %v831_v31 = vpop.f32.mrb[14].mxu0  ;;  %842 = vmatprep.subr.bf16.mxu1 %v1140_v17  ;;  %v748_v27 = vld [vmem:[#allocation11] ss:$0 sm:$0xff] }
 0x18f   :  { %v411_v32 = vadd.f32 %v410_v25, %v409_v19  ;;  %v354_v33 = vadd.f32 %v831_v31, %v1305_v21  ;;  %v345_v34 = vpop.f32.mrb[15].mxu0  ;;  %v401_v38 = vadd.f32 %v400_v24, %v399_v18  ;;  %v371_v40 = vmax.f32 %v351_v26, 0.0  ;;  %v914_v18 = vld [vmem:[#allocation12 + $0x28] sm:$0xff]   ;;  %v915_v19 = vld [vmem:[#allocation12 + $0x30] sm:$0xff]   ;;  %v916_v26 = vld [vmem:[#allocation12 + $0x38] sm:$0xff]  }
 0x190   :  { %v394_v35 = vadd.f32 %v393_v28, %v392_v20  ;;  %v404_v36 = vadd.f32 %v403_v29, %v402_v22  ;;  %v346_v37 = vadd.f32 %v1305_v21, %v345_v34  ;;  %v369_v43 = vmax.f32 %v343_v30, 0.0 }
 0x191   :  { %v412_v39 = vrot.slane %v411_v32, 2  ;;  %v372_v41 = vmax.f32 %v354_v33, 0.0  ;;  %843 = vmatpush3.bf16.msra.mxu1 %v906_v9 }
 0x192   :  { %v405_v42 = vrot.slane %v404_v36, 2  ;;  %v370_v44 = vmax.f32 %v346_v37, 0.0  ;;  %v441_v45 = vsel %vm440_vm1, %v394_v35, %v439_v13  ;;  %844 = vmatprep.subr.bf16.mxu1 %v1140_v17  ;;  %v910_v13 = vld [vmem:[#allocation12 + $0x8] sm:$0xff]  }
 0x193   :  { %v413_v46 = vadd.f32 %v412_v39, %v411_v32  ;;  %v423_v47 = vadd.f32 %v372_v41, %v371_v40  ;;  %v443_v48 = vsel %vm442_vm2, %v401_v38, %v441_v45  ;;  %855 = vmatpush3.bf16.msra.mxu0 %v910_v13 }
 0x194   :  { %v406_v49 = vadd.f32 %v405_v42, %v404_v36  ;;  %v416_v50 = vadd.f32 %v370_v44, %v369_v43  ;;  %856 = vmatprep.subr.bf16.mxu0 %v1140_v17 }
 0x195   :  { %v414_v51 = vrot.slane %v413_v46, 1  ;;  %v424_v52 = vrot.slane %v423_v47, 4  ;;  %845 = vmatpush3.bf16.msra.mxu1 %v907_v10 }
 0x196   :  { %v407_v53 = vrot.slane %v406_v49, 1  ;;  %v417_v54 = vrot.slane %v416_v50, 4  ;;  %846 = vmatprep.subr.bf16.mxu1 %v1140_v17 }
 0x197   :  { %v425_v55 = vadd.f32 %v424_v52, %v423_v47  ;;  %v415_v57 = vadd.f32 %v414_v51, %v413_v46  ;;  %857 = vmatpush3.bf16.msra.mxu0 %v911_v14 }
 0x198   :  { %v408_v21 = vadd.f32 %v407_v53, %v406_v49  ;;  %v418_v56 = vadd.f32 %v417_v54, %v416_v50  ;;  %858 = vmatprep.subr.bf16.mxu0 %v1140_v17 }
 0x199   :  { %v426_v58 = vrot.slane %v425_v55, 2  ;;  %847 = vmatpush3.bf16.msra.mxu1 %v908_v11 }
 0x19a   :  { %v419_v59 = vrot.slane %v418_v56, 2  ;;  %v445_v60 = vsel %vm444_vm3, %v408_v21, %v443_v48 }
 0x19b   :  { %v427_v61 = vadd.f32 %v426_v58, %v425_v55  ;;  %v447_v62 = vsel %vm446_vm4, %v415_v57, %v445_v60  ;;  %859 = vmatpush3.bf16.msra.mxu0 %v912_v15 }
 0x19c   :  { %v420_v63 = vadd.f32 %v419_v59, %v418_v56  ;;  %860 = vmatprep.subr.bf16.mxu0 %v1140_v17 }
 0x19d   :  { %v428_v0 = vrot.slane %v427_v61, 1 }
 0x19e   :  { %v421_v1 = vrot.slane %v420_v63, 1 }
 0x19f   :  { %v429_v3 = vadd.f32 %v428_v0, %v427_v61  ;;  %861 = vmatpush3.bf16.msra.mxu0 %v913_v16 }
 0x1a0   :  { %v422_v2 = vadd.f32 %v421_v1, %v420_v63  ;;  %862 = vmatprep.subr.bf16.mxu0 %v1140_v17 }
 0x1a2   :  { %v449_v4 = vsel %vm448_vm5, %v422_v2, %v447_v62 }
 0x1a3   :  { %v451_v5 = vsel %vm450_vm6, %v429_v3, %v449_v4  ;;  %863 = vmatpush3.bf16.msra.mxu0 %v914_v18 }
 0x1a4   :  { %v459_v6 = vmul.f32 0.0625, %v451_v5  ;;  %864 = vmatprep.subr.bf16.mxu0 %v1140_v17 }
 0x1a6   :  { %v460_v7 = vmul.f32 %v459_v6, %v459_v6 }
 0x1a7   :  { %865 = vmatpush3.bf16.msra.mxu0 %v915_v19 }
 0x1a8   :  { %461 = vadd.xlane.f32.xlu0 %v460_v7  ;;  %866 = vmatprep.subr.bf16.mxu0 %v1140_v17  ;;  %v757_v17 = vld [vmem:[#allocation14] ss:$0 sm:$0xff] }
 0x1ab   :  { %867 = vmatpush3.bf16.msra.mxu0 %v916_v26 }
 0x235   :  { %v462_v20 = vpop.xlane.xlu0 %461 }
 0x236   :  { %v463_v22 = vmax.f32 %v462_v20, 1e-24 }
 0x238   :  { %917 = vrsqrt.f32 %v463_v22 }
 0x242   :  { %v918_v23 = vpop.eup %917 }
 0x243   :  { %v465_v24 = vmul.f32 %v918_v23, %v459_v6 }
 0x245   :  { %v467_v25 = vpack.c.bf16 %v465_v24, %v465_v24  ;;  %466 = vst [vmem:[#allocation15] sm:$0xff] %v465_v24 }
 0x247   :  { %849 = vmatmul.mubr.bf16.vlgmr.msra.gmra.mrb[0].mxu1 %v467_v25 }
 0x31a   :  { %v573_v28 = vpop.f32.mrb[0].mxu1 }
 0x31b   :  { %v574_v29 = vadd.f32 %v748_v27, %v573_v28  ;;  %v850_v30 = vpop.f32.mrb[1].mxu1 }
 0x31c   :  { %v576_v31 = vpop.f32.mrb[2].mxu1 }
 0x31d   :  { %v579_v32 = vmax.f32 %v574_v29, 0.0  ;;  %v851_v33 = vpop.f32.mrb[3].mxu1 }
 0x31f   :  { %v580_v34 = vpack.c.bf16 %v579_v32, %v579_v32 }
 0x321   :  { %869 = vmatmul.mubr.bf16.vlgmr.msra.gmra.mrb[16].mxu0 %v580_v34 }
 0x3f4   :  { %v686_v35 = vpop.f32.mrb[16].mxu0 }
 0x3f5   :  { %v687_v36 = vadd.f32 %v757_v17, %v686_v35  ;;  %v870_v37 = vpop.f32.mrb[17].mxu0 }
 0x3f6   :  { %v689_v38 = vpop.f32.mrb[18].mxu0 }
 0x3f7   :  { %v871_v39 = vpop.f32.mrb[19].mxu0  ;;  %v692_v40 = vmul.f32 %v687_v36, %v687_v36 }
 0x3f9   :  { %693 = vadd.xlane.f32.xlu0 %v692_v40 }
 0x3fa   :  { %1086 = shalt.err (!%p1083_p4)
}
 0x3fb   :  { %s1087_s22 = scalar_lea.hbm %s1366_s7, 128 }
 0x3fc   :  { %p1088_p5 = scmp.ne.s32.totalorder %s1366_s7, %s1087_s22  ;;  %p1091_p6 = scmp.lt.u32.totalorder %s1087_s22, %s1366_s7 }
 0x3fe   :  { %p1093_p7 = pnand %p1091_p6, %p1088_p5 }
 0x400   :  { %1096 = shalt.err (!%p1093_p7)
}
 0x401   :  { %708 = dma.vmem_to_hbm [thread:$0]  %s706_s0, 128, %s1366_s7, [#allocation5]  }
 0x402   :  { %s1143_s1 = smov [#allocation16]  }
 0x403   :  { %s715_s28 = sshll.u32 %s1143_s1, 4  ;;  %s716_s28 = int_to_ptr.vmem [resolvable:$true] %s715_s28 }
 0x404   :  { %s1097_s2 = scalar_lea.vmem %s716_s28, 128  ;;  %p1102_p9 = scmp.lt.s32.totalorder %s716_s28, %s716_s28 }
 0x405   :  { %p1098_p8 = scmp.ne.s32.totalorder %s716_s28, %s1097_s2  ;;  %p1103_p10 = scmp.lt.s32.totalorder %s1097_s2, %s1097_s2 }
 0x407   :  { %p1104_p11 = por %p1103_p10, %p1102_p9 }
 0x409   :  { %p1105_p12 = pnand %p1104_p11, %p1098_p8 }
 0x486   :  { %v694_v41 = vpop.xlane.xlu0 %693 }
 0x487   :  { %v695_v42 = vmax.f32 %v694_v41, 1e-24 }
 0x489   :  { %919 = vrsqrt.f32 %v695_v42 }
 0x493   :  { %v920_v43 = vpop.eup %919 }
 0x494   :  { %v697_v44 = vmul.f32 %v920_v43, %v687_v36 }
 0x496   :  { %698 = vst [vmem:[#allocation16] sm:$0xff] %v697_v44 }
 0x497   :  { %1108 = shalt.err (!%p1105_p12)
}
 0x498   :  { %s1109_s7 = scalar_lea.hbm %s1367_s8, 128 }
 0x499   :  { %p1110_p13 = scmp.ne.s32.totalorder %s1367_s8, %s1109_s7  ;;  %p1113_p0 = scmp.lt.u32.totalorder %s1109_s7, %s1367_s8 }
 0x49b   :  { %p1115_p1 = pnand %p1113_p0, %p1110_p13 }
 0x49d   :  { %1118 = shalt.err (!%p1115_p1)
}
 0x49e   :  { %718 = dma.vmem_to_hbm [thread:$0]  %s716_s28, 128, %s1367_s8, [#allocation17]  }
 0x49f   :  { %1127 = dma.done.wait [#allocation5], 128  }
 0x4a0   :  { %1128 = vsyncadd [#allocation5], 4294967168 }
 0x4a1   :  { %1129 = dma.done.wait [#allocation17], 128  }
 0x4a2   :  { %1130 = vsyncadd [#allocation17], 4294967168 }
 0x4a3   :  { %725 = vsyncpa [#allocation4], 1 }
 0x4a4   :  { %726 = vsyncpa [#allocation7], 1 }
 0x4a5   :  { %727 = vsyncpa [#allocation10], 1 }
 0x4a6   :  { %728 = vsyncpa [#allocation13], 1 }
 0x4a7   :  { %729 = vsyncpa [#allocation5], 1 }
 0x4a8   :  { %730 = vsyncpa [#allocation17], 1 }

</bundles_post_ra>
